<compile_context>
chip_gen: v6e
topology: v6e:2x2x1
jax: 0.10.0
libtpu: 0.0.40
codegen_flags: <defaults>
</compile_context>

<pallas_src>
import jax
import jax.numpy as jnp
from jax.experimental import pallas as pl
from jax.experimental.pallas import tpu as pltpu

LANE = 128  # TPU vreg lane width


def linear_1x1_kernel(w_ref, b_ref, x_ref, o_ref):
    # y = x * W[0,0] + b[0] on a lane-dense (tr, 128) tile.
    # w_ref / b_ref are scalar-prefetched (1,) arrays in SMEM.
    o_ref[...] = x_ref[...] * w_ref[0] + b_ref[0]


def neural_network_forward(
    x,
    w,
    b,
    *,
    block_rows=4096,
    vmem_limit_bytes=32 * 1024 * 1024,
    fast_path_elems=1024 * LANE,
):
    """Forward of NeuralNetwork: nn.Linear(1, 1).

    x: (N, 1), w: (1, 1), b: (1,)  ->  (N, 1)
    """
    n, f = x.shape
    assert f == 1 and w.shape == (1, 1) and b.shape == (1,)
    dtype = x.dtype
    itemsize = jnp.dtype(dtype).itemsize
    # Sublane multiple for this dtype's packing (8 for f32, 16 for bf16, 32 for i8).
    sub = max(8, 32 // itemsize)

    w_s = w[0, 0]
    b_s = b[0]

    if n == 0:
        return jnp.zeros((0, 1), dtype)

    # ---- small-input fast path: single fused XLA elementwise, no custom call ----
    if n < fast_path_elems:
        return x * w_s + b_s

    # ---- Pallas path: lane-aligned bulk through the kernel, tiny tail in JAX ----
    n_main = (n // LANE) * LANE                 # lane-aligned bulk (>= fast_path_elems - 127)
    flat = x.reshape(-1)
    main = flat if n_main == n else flat[:n_main]
    rows = n_main // LANE
    slab = main.reshape(rows, LANE)             # free reshape: lane-dense 2-D slab

    # Block rows: <= block_rows, <= ceil(rows/2) (guarantee >= 2 grid steps so both
    # v7x TensorCores are used), rounded up to the dtype's sublane multiple.
    half = pl.cdiv(rows, 2)
    half = pl.cdiv(half, sub) * sub
    tr = max(sub, min(block_rows, half))
    grid = (pl.cdiv(rows, tr),)                 # partial last block masked by Pallas

    out_slab = pl.pallas_call(
        linear_1x1_kernel,
        out_shape=jax.ShapeDtypeStruct((rows, LANE), dtype),
        grid_spec=pltpu.PrefetchScalarGridSpec(
            # w and b land in SMEM before the grid runs; read as scalars in-kernel.
            num_scalar_prefetch=2,
            grid=grid,
            in_specs=[
                pl.BlockSpec((tr, LANE), lambda i, w_ref, b_ref: (i, 0)),
            ],
            out_specs=pl.BlockSpec((tr, LANE), lambda i, w_ref, b_ref: (i, 0)),
        ),
        compiler_params=pltpu.CompilerParams(
            dimension_semantics=("parallel",),   # shard grid across TCs (v7x)
            vmem_limit_bytes=vmem_limit_bytes,
        ),
        cost_estimate=pl.CostEstimate(
            flops=2 * rows * LANE,
            bytes_accessed=2 * rows * LANE * itemsize,
            transcendentals=0,
        ),
    )(w.reshape(-1), b.reshape(-1), slab)

    main_out = out_slab.reshape(n_main, 1)
    if n_main == n:
        return main_out

    # <128-element tail: plain JAX, negligible traffic.
    tail_out = flat[n_main:].reshape(-1, 1) * w_s + b_s
    return jnp.concatenate([main_out, tail_out], axis=0)


if __name__ == "__main__":
    key = jax.random.PRNGKey(0)
    kx, kw, kb, kx2, kx3 = jax.random.split(key, 5)

    # Deterministic parameters (PyTorch Linear(1,1) default init is U(-1, 1)).
    w = jax.random.uniform(kw, (1, 1), dtype=jnp.float32, minval=-1.0, maxval=1.0)
    b = jax.random.uniform(kb, (1,), dtype=jnp.float32, minval=-1.0, maxval=1.0)

    # 1) Natural module shape: batch=8, in_features=1 (small-input fast path).
    x = jax.random.normal(kx, (8, 1), dtype=jnp.float32)
    out = jax.block_until_ready(neural_network_forward(x, w, b))
    ref = x @ w.T + b
    assert out.shape == (8, 1)
    assert jnp.allclose(out, ref, atol=1e-6, rtol=1e-6)

    # 2) Force the Pallas path on a small odd batch (test-only tiny blocks):
    #    exercises 2-step grid, masked partial last block, and the tail branch.
    x2 = jax.random.normal(kx2, (3000, 1), dtype=jnp.float32)
    out2 = jax.block_until_ready(
        neural_network_forward(x2, w, b, fast_path_elems=256)
    )
    ref2 = x2 @ w.T + b
    assert out2.shape == (3000, 1)
    assert jnp.allclose(out2, ref2, atol=1e-6, rtol=1e-6)

    # 3) Intended production path: n a multiple of 128 (no pad/slice/concat),
    #    default block sizing -> 2 grid steps of (512, 128) blocks.
    n3 = 1024 * LANE
    x3 = jax.random.normal(kx3, (n3, 1), dtype=jnp.float32)
    out3 = jax.block_until_ready(neural_network_forward(x3, w, b))
    ref3 = x3 @ w.T + b
    assert out3.shape == (n3, 1)
    assert jnp.allclose(out3, ref3, atol=1e-6, rtol=1e-6)

    print("KERNEL_OK")
</pallas_src>

<mosaic_0001>
module attributes {stable_mosaic.version = 11 : i64} {
  func.func @linear_1x1_kernel(%arg0: i32, %arg1: memref<1xf32, #tpu.memory_space<smem>>, %arg2: memref<1xf32, #tpu.memory_space<smem>>, %arg3: memref<16x128xf32, #tpu.memory_space<vmem>>, %arg4: memref<16x128xf32, #tpu.memory_space<vmem>>) attributes {dimension_semantics = [#tpu.dimension_semantics<parallel>], iteration_bounds = array<i64: 2>, scalar_prefetch = 2 : i64, scratch_operands = 0 : i64, tpu.core_type = #tpu.core_type<tc>, window_params = [{transform_indices = @transform_0, window_bounds = array<i64: 16, 128>}, {transform_indices = @transform_1, window_bounds = array<i64: 16, 128>}]} {
    %c0 = arith.constant 0 : index
    %c0_0 = arith.constant 0 : index
    %0 = vector.load %arg3[%c0, %c0_0] : memref<16x128xf32, #tpu.memory_space<vmem>>, vector<16x128xf32>
    %c0_1 = arith.constant 0 : index
    %1 = memref.load %arg1[%c0_1] : memref<1xf32, #tpu.memory_space<smem>>
    %2 = vector.broadcast %1 : f32 to vector<16x128xf32>
    %3 = arith.mulf %0, %2 : vector<16x128xf32>
    %c0_2 = arith.constant 0 : index
    %4 = memref.load %arg2[%c0_2] : memref<1xf32, #tpu.memory_space<smem>>
    %5 = vector.broadcast %4 : f32 to vector<16x128xf32>
    %6 = arith.addf %3, %5 : vector<16x128xf32>
    %c0_3 = arith.constant 0 : index
    %c0_4 = arith.constant 0 : index
    %7 = vector.load %arg4[%c0_3, %c0_4] : memref<16x128xf32, #tpu.memory_space<vmem>>, vector<16x128xf32>
    tpu.vector_store %arg4[%c0_3, %c0_4], %6 {strides = array<i32>} : memref<16x128xf32, #tpu.memory_space<vmem>>, vector<16x128xf32>,
    return
  }
  func.func @transform_0(%arg0: i32, %arg1: memref<1xf32, #tpu.memory_space<smem>>, %arg2: memref<1xf32, #tpu.memory_space<smem>>) -> (i32, i32) {
    %c0_i32 = arith.constant 0 : i32
    %c0_i32_0 = arith.constant 0 : i32
    return %arg0, %c0_i32 : i32, i32
  }
  func.func @transform_1(%arg0: i32, %arg1: memref<1xf32, #tpu.memory_space<smem>>, %arg2: memref<1xf32, #tpu.memory_space<smem>>) -> (i32, i32) {
    %c0_i32 = arith.constant 0 : i32
    %c0_i32_0 = arith.constant 0 : i32
    return %arg0, %c0_i32 : i32, i32
  }
}

</mosaic_0001>

<bundles_post_ra>
// kernel: tpu_custom_call.1
= control target key start
LH: loop header
LB: loop body
LE: loop exit
PB: predicated region body
PF: predicated region fallthrough
CT: control target
= control target key end

     0   :  { %s619_s0 = inlined_call_operand.<no memory space> [shape: f32[1], index: 0, kind: input, shape index: {}]   ;;  %s620_s1 = inlined_call_operand.<no memory space> [shape: f32[1], index: 1, kind: input, shape index: {}]   ;;  %s621_s2 = inlined_call_operand.hbm [shape: f32[23,128], index: 2, kind: input, shape index: {}]   ;;  %s622_s3 = inlined_call_operand.hbm [shape: f32[23,128], index: 3, kind: output, shape index: {}]  }
   0x1   :  { %8 = sst [smem:[#allocation3]] %s619_s0 }
   0x2   :  { %9 = sst [smem:[#allocation4]] %s620_s1 }
   0x3   :  { %10 = vsyncpa [#allocation6], 0 }
   0x4   :  { %12 = vsyncpa [#allocation6 + $0x1], 0 }
   0x5   :  { %13 = vsyncpa [#allocation7], 0 }
   0x6   :  { %15 = vsyncpa [#allocation7 + $0x1], 0  ;;  %s451_s16 = smov 0   ;;  %s453_s17 = smov 0  }
   0x7   :  { %s455_s18 = smov 0   ;;  %s457_s19 = smov 0  }
   0x8 LB: > { %s472_s0 = sadd.s32 4294967295, %s417_s19   ;;  %s260_s1 = sadd.s32 4294967294, %s417_s19   ;;  %s417_s19 = sphi %s457_s19, %s632_s19   ;;  %s413_s18 = sphi %s455_s18, %s631_s18   ;;  %s409_s17 = sphi %s453_s17, %s630_s17   ;;  %s405_s16 = sphi %s451_s16, %s629_s16  }
   0x9   : > { %s476_s20 = sadd.s32 1, %s417_s19   ;;  %s28_s21 = sadd.s32 1, %s413_s18 }
   0xa   : > { %s25_s22 = ssub.s32 %s417_s19, %s476_s20  ;;  %p35_p0 = scmp.ne.s32.totalorder %s413_s18, %s409_s17 }
   0xb   : > { %p26_p1 = scmp.eq.s32.totalorder %s25_s22, 0  ;;  %p36_p2 = scmp.eq.s32.totalorder %s417_s19, 0 }
   0xc   : > { %p41_p3 = scmp.ne.s32.totalorder %s409_s17, %s405_s16  ;;  %p42_p4 = scmp.eq.s32.totalorder %s472_s0, 0 }
   0xd   : > { %s488_s23 = scalar_select %p26_p1, %s413_s18, %s28_s21  }
   0xe   : > { %p37_p5 = por %p36_p2, %p35_p0  ;;  %p490_p6 = por %p42_p4, %p41_p3 }
   0xf   : > { %p65_p7 = scmp.eq.s32.totalorder %s472_s0, 1  ;;  %p71_p8 = scmp.eq.s32.totalorder %s260_s1, 1 }
  0x10   : > { %p623_p11 = scmp.ge.s32.totalorder %s417_s19, 2 }
  0x11   : > { %p495_p9 = por %p65_p7, %p35_p0  ;;  %p499_p10 = por %p71_p8, %p41_p3 }
  0x12   : > { %87 = sbr.rel (%p623_p11) target bundleno = 55 (0x37), region = 16 }
  0x13   : > { %s626_s26 = scalar_select %p499_p10, 1, 0 }
  0x17   : > { %90 = sbr.rel (!%p37_p5) target bundleno = 55 (0x37), region = 20  ;;  %s91_s27 = sand.u32 (%p37_p5), 1, %s413_s18  }
  0x18   : > { %s264_s28 = sshll.u32 (%p37_p5), %s417_s19, 1  ;;  %s263_s29 = sshll.u32 (%p37_p5), %s91_s27, 4 }
  0x19   : > { %s97_s30 = ssub.s32 (%p37_p5), 3, %s264_s28  ;;  %s511_s6 = scalar_lea.sflag (%p37_p5), [#allocation6], %s91_s27 }
  0x1a   : > { %p98_p12 = scmp.lt.s32.totalorder (%p37_p5), %s97_s30, 2  ;;  %s95_s7 = scalar_lea.vmem (%p37_p5), [#allocation5], %s263_s29 }
  0x1c   : > { %s634_s30 = smov (!%p98_p12, %s97_s30), 2 }
  0x1d   : > { %s508_s4 = sshll.u32 %s634_s30, 7 }
  0x1e   : > { %s102_s5 = ssub.s32 256, %s508_s4 }
  0x1f   : > { %103 = vsyncadd %s511_s6, %s102_s5  ;;  %p266_p13 = scmp.ne.s32.totalorder %s508_s4, 0  ;;  %s282_s8 = sshll.u32 %s417_s19, 8 }
  0x20   : > { %s519_s11 = scalar_lea.hbm %s621_s2, %s282_s8  ;;  %s108_s12 = sshll.u32 %s95_s7, 4  ;;  %s521_s12 = int_to_ptr.vmem [resolvable:$true] %s108_s12 }
  0x21   : > { %s327_s13 = scalar_lea.hbm %s519_s11, %s508_s4  ;;  %s331_s1 = scalar_lea.hbm %s621_s2, 384 }
  0x22   : > { %p328_p0 = scmp.ne.s32.totalorder %s519_s11, %s327_s13  ;;  %p332_p3 = scmp.lt.s32.totalorder %s519_s11, %s621_s2 }
  0x23   : > { %p333_p4 = scmp.lt.s32.totalorder %s331_s1, %s327_s13 }
  0x24   : > { %p329_p1 = pnand %p328_p0, %p266_p13 }
  0x25   : > { %p334_p5 = por %p333_p4, %p332_p3 }
  0x26   : > { %p330_p2 = pneg %p329_p1 }
  0x28   : > { %p335_p7 = pnand %p334_p5, %p330_p2 }
  0x2a   : > { %338 = shalt.err (!%p335_p7)
}
  0x2b   : > { %s339_s27 = scalar_lea.vmem %s521_s12, %s508_s4  ;;  %s419_s28 = smov [#allocation5]  }
  0x2c   : > { %p340_p8 = scmp.ne.s32.totalorder %s521_s12, %s339_s27  ;;  %s343_s29 = sshll.u32 %s419_s28, 4  ;;  %s344_s29 = int_to_ptr.vmem [resolvable:$false] %s343_s29 }
  0x2d   : > { %s345_s30 = scalar_lea.vmem %s344_s29, 512  ;;  %p346_p1 = scmp.lt.s32.totalorder %s521_s12, %s344_s29 }
  0x2e   : > { %p341_p12 = pnand %p340_p8, %p266_p13  ;;  %p347_p11 = scmp.lt.s32.totalorder %s345_s30, %s339_s27 }
  0x30   : > { %p342_p0 = pneg %p341_p12  ;;  %p348_p10 = por %p347_p11, %p346_p1 }
  0x32   : > { %p349_p3 = pnand %p348_p10, %p342_p0 }
  0x34   : > { %352 = shalt.err (!%p349_p3)
}
  0x35   : > { %s420_s5 = smov 128   ;;  %s421_s7 = smov 8  }
  0x36   : > { %114 = dma.hbm_to_vmem [thread:$0]  (%p266_p13), %s519_s11, %s508_s4, %s521_s12, %s511_s6, %s420_s5, %s420_s5, %s421_s7  }
  0x37 PF: > { %p270_p2 = scmp.ge.s32.totalorder %s417_s19, 1  ;;  %p116_p4 = scmp.lt.s32.totalorder %s417_s19, 3 }
  0x39   : > { %p117_p5 = pnand %p270_p2, %p116_p4 }
  0x3a   : > { %s550_s8 = sand.u32 (!%p117_p5), 1, %s409_s17  }
  0x3b   : > { %120 = sbr.rel (%p117_p5) target bundleno = 104 (0x68), region = 24  ;;  %s271_s9 = sshll.u32 (!%p117_p5), %s550_s8, 4 }
  0x3c   : > { %s123_s10 = scalar_lea.sflag (!%p117_p5), [#allocation6], %s550_s8  ;;  %s126_s13 = scalar_lea.vmem (!%p117_p5), [#allocation5], %s271_s9 }
  0x40   : > { %396 = dma.done.wait (%p490_p6), %s123_s10, 256  }
  0x41   : > { %398 = vsyncadd (%p490_p6), %s123_s10, 4294967040  ;;  %s157_s4 = sld [smem:[#allocation3]]  ;;  %v155_v0 = vld [vmem:[%s126_s13] sm:$0xff]  ;;  %v156_v2 = vld [vmem:[%s126_s13 + $0x8] sm:$0xff]  ;;  %s144_s11 = scalar_lea.vmem [#allocation8], %s271_s9 }
  0x42   : > { %s161_s6 = sld [smem:[#allocation4]]  ;;  %s168_s12 = scalar_lea.sflag [#allocation7], %s550_s8 }
  0x43   : > { %s274_s24 = sshll.u32 (%p495_p9), %s472_s0, 1 }
  0x44   : > { %s176_s14 = ssub.s32 (%p495_p9), 3, %s274_s24 }
  0x45   : > { %p177_p6 = scmp.lt.s32.totalorder (%p495_p9), %s176_s14, 2 }
  0x47   : > { %v158_v1 = vstv %s157_s4 }
  0x48   : > { %v159_v3 = vmul.f32 %v158_v1, %v155_v0  ;;  %v162_v4 = vstv %s161_s6  ;;  %v160_v5 = vmul.f32 %v158_v1, %v156_v2  ;;  %174 = sbr.rel (!%p495_p9) target bundleno = 104 (0x68), region = 32 }
  0x4a   : > { %v163_v6 = vadd.f32 %v162_v4, %v159_v3  ;;  %v164_v7 = vadd.f32 %v162_v4, %v160_v5 }
  0x4c   : > { %165 = vst [vmem:[%s144_s11] sm:$0xff] %v163_v6  ;;  %166 = vst [vmem:[%s144_s11 + $0x8] sm:$0xff] %v164_v7 }
  0x4d   : > { %s636_s14 = smov (!%p177_p6, %s176_s14), 2 }
  0x4e   : > { %s562_s15 = sshll.u32 %s636_s14, 7 }
  0x4f   : > { %s181_s1 = ssub.s32 256, %s562_s15 }
  0x50   : > { %182 = vsyncadd %s168_s12, %s181_s1  ;;  %p276_p10 = scmp.ne.s32.totalorder %s562_s15, 0  ;;  %s283_s21 = sshll.u32 %s472_s0, 8 }
  0x51   : > { %s572_s27 = scalar_lea.hbm %s622_s3, %s283_s21  ;;  %s187_s28 = sshll.u32 %s144_s11, 4  ;;  %s574_s28 = int_to_ptr.vmem [resolvable:$true] %s187_s28 }
  0x52   : > { %s353_s29 = scalar_lea.vmem %s574_s28, %s562_s15  ;;  %s422_s30 = smov [#allocation8]  }
  0x53   : > { %p354_p9 = scmp.ne.s32.totalorder %s574_s28, %s353_s29  ;;  %s357_s5 = sshll.u32 %s422_s30, 4  ;;  %s358_s5 = int_to_ptr.vmem [resolvable:$false] %s357_s5 }
  0x54   : > { %s359_s0 = scalar_lea.vmem %s358_s5, 512  ;;  %p360_p7 = scmp.lt.s32.totalorder %s574_s28, %s358_s5 }
  0x55   : > { %p355_p11 = pnand %p354_p9, %p276_p10  ;;  %p361_p8 = scmp.lt.s32.totalorder %s359_s0, %s353_s29 }
  0x57   : > { %p356_p13 = pneg %p355_p11  ;;  %p362_p12 = por %p361_p8, %p360_p7 }
  0x59   : > { %p363_p0 = pnand %p362_p12, %p356_p13 }
  0x5b   : > { %366 = shalt.err (!%p363_p0)
}
  0x5c   : > { %s367_s7 = scalar_lea.hbm %s572_s27, %s562_s15  ;;  %s371_s13 = scalar_lea.hbm %s622_s3, 384 }
  0x5d   : > { %p368_p1 = scmp.ne.s32.totalorder %s572_s27, %s367_s7  ;;  %p372_p4 = scmp.lt.s32.totalorder %s572_s27, %s622_s3 }
  0x5e   : > { %p373_p5 = scmp.lt.s32.totalorder %s371_s13, %s367_s7 }
  0x5f   : > { %p369_p3 = pnand %p368_p1, %p276_p10 }
  0x60   : > { %p374_p6 = por %p373_p5, %p372_p4 }
  0x61   : > { %p370_p2 = pneg %p369_p3 }
  0x63   : > { %p375_p9 = pnand %p374_p6, %p370_p2 }
  0x65   : > { %378 = shalt.err (!%p375_p9)
}
  0x66   : > { %s423_s11 = smov 128   ;;  %s424_s24 = smov 8  }
  0x67   : > { %193 = dma.vmem_to_hbm [thread:$0]  (%p276_p10), %s574_s28, %s562_s15, %s572_s27, %s168_s12, %s423_s11, %s423_s11, %s424_s24  }
  0x68 PF: > { %s202_s14 = sand.u32 1, %s405_s16   ;;  %p627_p11 = scmp.ne.s32.totalorder %s626_s26, 0 }
  0x69   : > { %p628_p13 = scmp.ge.s32.totalorder %s417_s19, 2  ;;  %s203_s1 = scalar_lea.sflag [#allocation7], %s202_s14 }
  0x6b   : > { %p287_p7 = pnand %p628_p13, %p627_p11 }
  0x6d   : > { %p288_p8 = pneg %p287_p7 }
  0x6f   : > { %400 = dma.done.wait (%p288_p8), %s203_s1, 256  }
  0x70   : > { %402 = vsyncadd (%p288_p8), %s203_s1, 4294967040  ;;  %p18_p12 = scmp.ge.s32.totalorder %s476_s20, 4   ;;  %s629_s16 = smov %s409_s17 }
  0x71   : > { %s630_s17 = smov %s413_s18  ;;  %s631_s18 = smov %s488_s23 }
  0x72   : > { %s632_s19 = smov %s476_s20  ;;  %20 = sbr.rel (!%p18_p12) target bundleno = 8 (0x8), region = 69 }
  0x77   :  { %208 = vsyncpa [#allocation6], 1 }
  0x78   :  { %210 = vsyncpa [#allocation6 + $0x1], 1 }
  0x79   :  { %211 = vsyncpa [#allocation7], 1 }
  0x7a   :  { %213 = vsyncpa [#allocation7 + $0x1], 1 }

</bundles_post_ra>
